<compile_context>
chip_gen: v7x
topology: tpu7x:2x2x1
jax: 0.10.0
libtpu: 0.0.40
codegen_flags: <defaults>
</compile_context>

<pallas_src>
import math

import jax
import jax.numpy as jnp
from jax.experimental import pallas as pl
from jax.experimental.pallas import tpu as pltpu


_PAD = -1.0e4  # finite, but negative enough that exp() underflows to exactly 0 in f32.


def _round_up(x, m):
    return ((x + m - 1) // m) * m


def _softplus(x):
    # stable log(1 + exp(x)); equals the direct torch form wherever it does not overflow.
    return jnp.maximum(x, 0.0) + jnp.log(1.0 + jnp.exp(-jnp.abs(x)))


def make_sphereface2_loss(margin=0.2, scale=32.0, lanbuda=0.7, t=3, margin_type="C",
                          block_b=256, block_c=2048):
    """Builds a callable loss(inputs_dict, labels, bias) -> scalar f32."""
    cos_m = math.cos(margin)
    sin_m = math.sin(margin)
    th = math.cos(math.pi - margin)
    mmm = 1.0 + math.cos(math.pi - margin)
    # fold fun_g and scale:  scale*fun_g(w) = scale*(2*((w+1)/2)^t - 1) = coeff*(w+1)^t - scale
    coeff = 2.0 * scale / (2.0 ** t)

    def make_kernel(TB, TC):
        n_chunks = TC // 128

        def kernel(x_ref, c_ref, out_ref, acc_ref):
            k = pl.program_id(1)          # class tile ("arbitrary", reduction, last)

            @pl.when(k == 0)
            def _init():
                acc_ref[...] = jnp.zeros_like(acc_ref)

            x = x_ref[...].astype(jnp.float32)     # (TB, TC), cast from native dtype
            const = c_ref[0, 0]                    # SMEM scalar: folded bias/margin/scale

            if margin_type == "A":
                sin = jnp.sqrt(jnp.maximum(1.0 - x * x, 0.0))
                w = x * cos_m + sin * sin_m
            else:  # 'C'
                w = x
            p = w + 1.0
            pw = p
            for _ in range(t - 1):                 # static t -> unrolled VPU multiplies
                pw = pw * p
            cmn = coeff * pw + const
            # stable softplus; padded entries (x = -1e4) contribute exactly 0.
            s = jnp.maximum(cmn, 0.0) + jnp.log(1.0 + jnp.exp(-jnp.abs(cmn)))

            # lane-chunked partial sum: per-vreg VPU adds only; the single cross-lane
            # reduction is done on the tiny (B, 128) output in the wrapper.
            part = s[:, 0:128]
            for j in range(1, n_chunks):
                part = part + s[:, j * 128:(j + 1) * 128]
            acc_ref[...] = acc_ref[...] + part

            @pl.when(k == pl.num_programs(1) - 1)
            def _fin():
                out_ref[...] = acc_ref[...]        # lane-dense (TB, 128) write

        return kernel

    def loss_fn(inputs, labels, bias):
        # `features` is unpacked but unused in the torch forward; same here.
        # TODO(synk): biggest remaining win is fusing the upstream cosine-logits matmul
        # (features @ W^T) into this kernel so the (B, C) logits never touch HBM.
        _features, logits = inputs["features"], inputs["logits"]
        B, C = logits.shape

        TB = min(block_b, _round_up(B, 16))        # multiple of 16 -> bf16-safe sublanes
        if _round_up(B, TB) // TB < 2 and B > 16:
            # keep >= 2 batch tiles so both v7x TensorCores get work (no-op on v5e/v6e).
            TB = max(16, _round_up((B + 1) // 2, 16))
        TC = min(block_c, _round_up(C, 128))       # multiple of 128 lanes
        B_pad = _round_up(B, TB)
        C_pad = _round_up(C, TC)

        logits_p = logits
        if (B_pad, C_pad) != (B, C):
            # large-negative padding => padded entries contribute exactly 0 in-kernel.
            logits_p = jnp.pad(logits, ((0, B_pad - B), (0, C_pad - C)),
                               constant_values=_PAD)

        b = jnp.asarray(bias, jnp.float32).reshape(-1)[0]
        if margin_type == "A":
            const_n = b - scale
        else:  # 'C'
            const_n = b + scale * (margin - 1.0)
        const_2d = jnp.reshape(const_n, (1, 1)).astype(jnp.float32)

        grid = (B_pad // TB, C_pad // TC)

        # VMEM request: double-buffered input/output tiles + estimated materialized f32
        # intermediates; capped at 48 MiB so it stays inside v7x's 64 MiB/TC.
        itemsize = jnp.dtype(logits.dtype).itemsize
        in_tile = TB * TC * itemsize
        f32_tile = TB * TC * 4
        out_tile = TB * 128 * 4
        est = 2 * in_tile + 2 * out_tile + 12 * f32_tile + (2 << 20)
        vmem_limit = int(min(max(est, 24 << 20), 48 << 20))

        out = pl.pallas_call(
            make_kernel(TB, TC),
            out_shape=jax.ShapeDtypeStruct((B_pad, 128), jnp.float32),
            grid_spec=pltpu.PrefetchScalarGridSpec(
                num_scalar_prefetch=0,
                grid=grid,
                in_specs=[
                    pl.BlockSpec((TB, TC), lambda i, k: (i, k)),        # logits tile
                    pl.BlockSpec(memory_space=pltpu.MemorySpace.SMEM),  # folded constant
                ],
                out_specs=pl.BlockSpec((TB, 128), lambda i, k: (i, 0)),
                scratch_shapes=[pltpu.VMEM((TB, 128), jnp.float32)],
            ),
            compiler_params=pltpu.CompilerParams(
                dimension_semantics=("parallel", "arbitrary"),
                vmem_limit_bytes=vmem_limit,
            ),
        )(logits_p, const_2d)

        # ---- tiny per-row epilogue (B elements) outside the dense kernel ------------
        row_neg_sum = jnp.sum(out[:B, :], axis=1)                      # (B,)

        zf = logits.astype(jnp.float32)
        lab = labels.reshape(-1).astype(jnp.int32)
        z_t = jnp.take_along_axis(zf, lab[:, None], axis=1)[:, 0]      # (B,) target logit
        if margin_type == "A":
            sin_t = jnp.sqrt(jnp.maximum(1.0 - z_t * z_t, 0.0))
            wp = jnp.where(z_t > th, z_t * cos_m - sin_t * sin_m, z_t - mmm)
            wn = z_t * cos_m + sin_t * sin_m
            cmp_t = coeff * (wp + 1.0) ** t + (b - scale)
            cmn_t = coeff * (wn + 1.0) ** t + (b - scale)
        else:  # 'C'
            cmp_t = coeff * (z_t + 1.0) ** t + (b - scale * (1.0 + margin))
            cmn_t = coeff * (z_t + 1.0) ** t + (b + scale * (margin - 1.0))
        pos_t = lanbuda * _softplus(-cmp_t)
        neg_t = (1.0 - lanbuda) * _softplus(cmn_t)

        # (1 - lanbuda) deferred to here; swap the target column's negative term for the
        # positive one.  Padded rows never enter (only out[:B] is read).
        per_row = (1.0 - lanbuda) * row_neg_sum + (pos_t - neg_t)
        return jnp.mean(per_row)

    return loss_fn


def _reference_loss(inputs, labels, bias, margin=0.2, scale=32.0, lanbuda=0.7, t=3,
                    margin_type="C"):
    """Pure-JAX mirror of the torch forward, for correctness checking."""
    logits = inputs["logits"].astype(jnp.float32)
    cos_m = math.cos(margin)
    sin_m = math.sin(margin)
    th = math.cos(math.pi - margin)
    mmm = 1.0 + math.cos(math.pi - margin)
    b = jnp.asarray(bias, jnp.float32).reshape(1, 1)[0, 0]

    def fun_g(z):
        return 2.0 * ((z + 1.0) * 0.5) ** t - 1.0

    if margin_type == "A":
        sin = jnp.sqrt(jnp.maximum(1.0 - logits ** 2, 0.0))
        cmp_ = scale * fun_g(
            jnp.where(logits > th, logits * cos_m - sin * sin_m, logits - mmm)) + b
        cmn_ = scale * fun_g(logits * cos_m + sin * sin_m) + b
    else:
        cmp_ = scale * (fun_g(logits) - margin) + b
        cmn_ = scale * (fun_g(logits) + margin) + b
    cpt = lanbuda * jnp.log(1.0 + jnp.exp(-cmp_))
    cnt = (1.0 - lanbuda) * jnp.log(1.0 + jnp.exp(cmn_))
    tm = jax.nn.one_hot(labels, logits.shape[1], dtype=jnp.float32)
    return jnp.mean(jnp.sum(tm * cpt + (1.0 - tm) * cnt, axis=1))


if __name__ == "__main__":
    key = jax.random.PRNGKey(0)
    k_feat, k_logit, k_logit2 = jax.random.split(key, 3)

    # ---- test 1: module defaults (margin_type 'C'), tiny shapes, single tile ------
    batch, feat_dim, num_classes = 2, 32, 10
    features = jax.random.normal(k_feat, (batch, feat_dim), dtype=jnp.float32)
    logits = jnp.tanh(jax.random.normal(k_logit, (batch, num_classes), dtype=jnp.float32))
    labels = jnp.array([1, 7], dtype=jnp.int32)
    bias = jnp.zeros((1, 1), dtype=jnp.float32)   # nn.Parameter(torch.zeros(1, 1))
    inputs = {"features": features, "logits": logits}

    loss_fn = make_sphereface2_loss(margin=0.2, scale=32.0, lanbuda=0.7, t=3,
                                    margin_type="C")
    loss = jax.block_until_ready(loss_fn(inputs, labels, bias))
    ref = _reference_loss(inputs, labels, bias)
    assert jnp.allclose(loss, ref, rtol=1e-5, atol=1e-5), (loss, ref)

    # ---- test 2: multi-tile grid, ragged shapes, bf16 logits, margin_type 'A' -----
    batch2, num_classes2 = 20, 300
    features2 = jax.random.normal(k_feat, (batch2, feat_dim), dtype=jnp.float32)
    logits2 = jnp.tanh(
        jax.random.normal(k_logit2, (batch2, num_classes2), dtype=jnp.float32)
    ).astype(jnp.bfloat16)
    labels2 = (jnp.arange(batch2, dtype=jnp.int32) * 13) % num_classes2
    bias2 = jnp.full((1, 1), 0.1, dtype=jnp.float32)
    inputs2 = {"features": features2, "logits": logits2}

    loss_fn2 = make_sphereface2_loss(margin=0.15, scale=32.0, lanbuda=0.7, t=3,
                                     margin_type="A", block_b=16, block_c=128)
    loss2 = jax.block_until_ready(loss_fn2(inputs2, labels2, bias2))
    ref2 = _reference_loss(inputs2, labels2, bias2, margin=0.15, margin_type="A")
    assert jnp.allclose(loss2, ref2, rtol=1e-4, atol=1e-4), (loss2, ref2)

    print("KERNEL_OK")
</pallas_src>

<mosaic_0001>
module attributes {stable_mosaic.version = 11 : i64} {
  func.func @kernel(%arg0: i32, %arg1: i32, %arg2: memref<16x128xf32, #tpu.memory_space<vmem>>, %arg3: memref<1x1xf32, #tpu.memory_space<smem>>, %arg4: memref<16x128xf32, #tpu.memory_space<vmem>>, %arg5: memref<16x128xf32, #tpu.memory_space<vmem>>) attributes {dimension_semantics = [#tpu.dimension_semantics<parallel>, #tpu.dimension_semantics<arbitrary>], iteration_bounds = array<i64: 1, 1>, scalar_prefetch = 0 : i64, scratch_operands = 1 : i64, tpu.core_type = #tpu.core_type<tc>, window_params = [{transform_indices = @transform_0, window_bounds = array<i64: 16, 128>}, {transform_indices = @transform_1, window_bounds = array<i64: 1, 1>}, {transform_indices = @transform_2, window_bounds = array<i64: 16, 128>}]} {
    %c0_i32 = arith.constant 0 : i32
    %0 = arith.cmpi eq, %arg1, %c0_i32 : i32
    %1 = arith.extui %0 : i1 to i32
    %c0_i32_0 = arith.constant 0 : i32
    %2 = arith.cmpi ne, %1, %c0_i32_0 : i32
    scf.if %2 {
      %cst_14 = arith.constant 0.000000e+00 : f32
      %29 = vector.broadcast %cst_14 : f32 to vector<16x128xf32>
      %c0_15 = arith.constant 0 : index
      %c0_16 = arith.constant 0 : index
      %30 = vector.load %arg5[%c0_15, %c0_16] : memref<16x128xf32, #tpu.memory_space<vmem>>, vector<16x128xf32>
      tpu.vector_store %arg5[%c0_15, %c0_16], %29 {strides = array<i32>} : memref<16x128xf32, #tpu.memory_space<vmem>>, vector<16x128xf32>,
    } else {
    }
    %c0 = arith.constant 0 : index
    %c0_1 = arith.constant 0 : index
    %3 = vector.load %arg2[%c0, %c0_1] : memref<16x128xf32, #tpu.memory_space<vmem>>, vector<16x128xf32>
    %c0_2 = arith.constant 0 : index
    %c0_3 = arith.constant 0 : index
    %4 = memref.load %arg3[%c0_2, %c0_3] : memref<1x1xf32, #tpu.memory_space<smem>>
    %cst = arith.constant 1.000000e+00 : f32
    %5 = vector.broadcast %cst : f32 to vector<16x128xf32>
    %6 = arith.addf %3, %5 : vector<16x128xf32>
    %7 = arith.mulf %6, %6 : vector<16x128xf32>
    %8 = arith.mulf %7, %6 : vector<16x128xf32>
    %cst_4 = arith.constant 8.000000e+00 : f32
    %9 = vector.broadcast %cst_4 : f32 to vector<16x128xf32>
    %10 = arith.mulf %9, %8 : vector<16x128xf32>
    %11 = vector.broadcast %4 : f32 to vector<16x128xf32>
    %12 = arith.addf %10, %11 : vector<16x128xf32>
    %cst_5 = arith.constant 0.000000e+00 : f32
    %13 = vector.broadcast %cst_5 : f32 to vector<16x128xf32>
    %14 = arith.maximumf %12, %13 : vector<16x128xf32>
    %15 = math.absf %12 : vector<16x128xf32>
    %cst_6 = arith.constant 0.000000e+00 : f32
    %16 = vector.broadcast %cst_6 : f32 to vector<16x128xf32>
    %17 = arith.subf %16, %15 : vector<16x128xf32>
    %18 = math.exp %17 : vector<16x128xf32>
    %cst_7 = arith.constant 1.000000e+00 : f32
    %19 = vector.broadcast %cst_7 : f32 to vector<16x128xf32>
    %20 = arith.addf %19, %18 : vector<16x128xf32>
    %21 = math.log %20 : vector<16x128xf32>
    %22 = arith.addf %14, %21 : vector<16x128xf32>
    %c0_8 = arith.constant 0 : index
    %c0_9 = arith.constant 0 : index
    %23 = vector.load %arg5[%c0_8, %c0_9] : memref<16x128xf32, #tpu.memory_space<vmem>>, vector<16x128xf32>
    %24 = arith.addf %23, %22 : vector<16x128xf32>
    %c0_10 = arith.constant 0 : index
    %c0_11 = arith.constant 0 : index
    %25 = vector.load %arg5[%c0_10, %c0_11] : memref<16x128xf32, #tpu.memory_space<vmem>>, vector<16x128xf32>
    tpu.vector_store %arg5[%c0_10, %c0_11], %24 {strides = array<i32>} : memref<16x128xf32, #tpu.memory_space<vmem>>, vector<16x128xf32>,
    %c0_i32_12 = arith.constant 0 : i32
    %26 = arith.cmpi eq, %arg1, %c0_i32_12 : i32
    %27 = arith.extui %26 : i1 to i32
    %c0_i32_13 = arith.constant 0 : i32
    %28 = arith.cmpi ne, %27, %c0_i32_13 : i32
    scf.if %28 {
      %c0_14 = arith.constant 0 : index
      %c0_15 = arith.constant 0 : index
      %29 = vector.load %arg5[%c0_14, %c0_15] : memref<16x128xf32, #tpu.memory_space<vmem>>, vector<16x128xf32>
      %c0_16 = arith.constant 0 : index
      %c0_17 = arith.constant 0 : index
      %30 = vector.load %arg4[%c0_16, %c0_17] : memref<16x128xf32, #tpu.memory_space<vmem>>, vector<16x128xf32>
      tpu.vector_store %arg4[%c0_16, %c0_17], %29 {strides = array<i32>} : memref<16x128xf32, #tpu.memory_space<vmem>>, vector<16x128xf32>,
    } else {
    }
    return
  }
  func.func @transform_0(%arg0: i32, %arg1: i32) -> (i32, i32) {
    %c0_i32 = arith.constant 0 : i32
    return %arg0, %arg1 : i32, i32
  }
  func.func @transform_1(%arg0: i32, %arg1: i32) -> (i32, i32) {
    %c0_i32 = arith.constant 0 : i32
    %c0_i32_0 = arith.constant 0 : i32
    %c0_i32_1 = arith.constant 0 : i32
    return %c0_i32, %c0_i32_0 : i32, i32
  }
  func.func @transform_2(%arg0: i32, %arg1: i32) -> (i32, i32) {
    %c0_i32 = arith.constant 0 : i32
    %c0_i32_0 = arith.constant 0 : i32
    return %arg0, %c0_i32 : i32, i32
  }
}

</mosaic_0001>

<bundles_post_ra>
// kernel: tpu_custom_call.1
= control target key start
LH: loop header
LB: loop body
LE: loop exit
PB: predicated region body
PF: predicated region fallthrough
CT: control target
= control target key end

     0   :  { %8 = vsyncpa [#allocation5], 0  ;;  %s207_s0 = inlined_call_operand.hbm [shape: f32[16,128], index: 0, kind: input, shape index: {}]   ;;  %s208_s1 = inlined_call_operand.<no memory space> [shape: f32[1,1], index: 1, kind: input, shape index: {}]   ;;  %s209_s2 = inlined_call_operand.hbm [shape: f32[16,128], index: 2, kind: output, shape index: {}]  }
   0x1   :  { %9 = vsyncpa [#allocation6], 0  ;;  %s155_s9 = smov [#allocation4]   ;;  %s107_s13 = scalar_lea.hbm %s207_s0, 256 }
   0x2   :  { %s15_s10 = sshll.u32 %s155_s9, 4  ;;  %p108_p0 = scmp.ne.s32.totalorder %s207_s0, %s107_s13  ;;  %s16_s10 = int_to_ptr.vmem [resolvable:$true] %s15_s10 }
   0x3   :  { %p111_p1 = scmp.lt.u32.totalorder %s107_s13, %s207_s0 }
   0x5   :  { %p113_p2 = pnand %p111_p1, %p108_p0 }
   0x7   :  { %116 = shalt.err (!%p113_p2)
}
   0x8   :  { %s117_s18 = scalar_lea.vmem %s16_s10, 256  ;;  %p122_p4 = scmp.lt.s32.totalorder %s16_s10, %s16_s10 }
   0x9   :  { %p118_p3 = scmp.ne.s32.totalorder %s16_s10, %s117_s18  ;;  %p123_p5 = scmp.lt.s32.totalorder %s117_s18, %s117_s18 }
   0xb   :  { %p124_p6 = por %p123_p5, %p122_p4 }
   0xd   :  { %p125_p7 = pnand %p124_p6, %p118_p3 }
   0xf   :  { %128 = shalt.err (!%p125_p7)
}
  0x10   :  { %s156_s19 = smov 128   ;;  %s157_s20 = smov 8  }
  0x11   :  { %21 = dma.hbm_to_vmem [thread:$0]  %s207_s0, 256, %s16_s10, [#allocation5], %s156_s19, %s156_s19, %s157_s20  }
  0x12   :  { %151 = dma.done.wait [#allocation5], 256  }
  0x13   :  { %152 = vsyncadd [#allocation5], 4294967040  ;;  %v33_v0 = vld [vmem:[#allocation4] sm:$0xff]  ;;  %v34_v1 = vld [vmem:[#allocation4 + $0x8] sm:$0xff]  ;;  %v44_v8 = vstv %s208_s1  ;;  %s158_s0 = smov [#allocation7]  }
  0x14   :  { %v36_v2 = vadd.f32 1.0, %v33_v0  ;;  %v37_v3 = vadd.f32 1.0, %v34_v1  ;;  %s83_s1 = sshll.u32 %s158_s0, 4  ;;  %s84_s1 = int_to_ptr.vmem [resolvable:$true] %s83_s1 }
  0x15   :  { %s129_s25 = scalar_lea.vmem %s84_s1, 256  ;;  %p134_p9 = scmp.lt.s32.totalorder %s84_s1, %s84_s1 }
  0x16   :  { %v38_v4 = vmul.f32 %v36_v2, %v36_v2  ;;  %v39_v5 = vmul.f32 %v37_v3, %v37_v3  ;;  %p130_p8 = scmp.ne.s32.totalorder %s84_s1, %s129_s25  ;;  %p135_p10 = scmp.lt.s32.totalorder %s129_s25, %s129_s25 }
  0x18   :  { %v40_v6 = vmul.f32 %v38_v4, %v36_v2  ;;  %v41_v7 = vmul.f32 %v39_v5, %v37_v3  ;;  %p136_p11 = por %p135_p10, %p134_p9 }
  0x1a   :  { %v42_v9 = vmul.f32 8.0, %v40_v6  ;;  %v43_v10 = vmul.f32 8.0, %v41_v7  ;;  %p137_p12 = pnand %p136_p11, %p130_p8 }
  0x1c   :  { %v45_v11 = vadd.f32 %v44_v8, %v42_v9  ;;  %v46_v12 = vadd.f32 %v44_v8, %v43_v10 }
  0x1e   :  { %v49_v13 = vand.u32 2147483647, %v45_v11  ;;  %v50_v14 = vand.u32 2147483647, %v46_v12  ;;  %v47_v23 = vmax.f32 %v45_v11, 0.0  ;;  %v48_v25 = vmax.f32 %v46_v12, 0.0 }
  0x20   :  { %v51_v15 = vsub.f32 0.0, %v49_v13  ;;  %v52_v16 = vsub.f32 0.0, %v50_v14 }
  0x22   :  { %v53_v17 = vmul.f32 1.442695, %v51_v15  ;;  %v55_v18 = vmul.f32 1.442695, %v52_v16 }
  0x24   :  { %99 = vpow2.f32 %v53_v17 }
  0x25   :  { %101 = vpow2.f32 %v55_v18 }
  0x2e   :  { %v100_v19 = vpop.eup %99 }
  0x2f   :  { %v102_v20 = vpop.eup %101  ;;  %v57_v21 = vadd.f32 1.0, %v100_v19 }
  0x30   :  { %v58_v22 = vadd.f32 1.0, %v102_v20 }
  0x31   :  { %103 = vlog2.f32 %v57_v21 }
  0x32   :  { %105 = vlog2.f32 %v58_v22 }
  0x3b   :  { %v104_v24 = vpop.eup %103 }
  0x3c   :  { %v106_v26 = vpop.eup %105  ;;  %v60_v27 = vmul.f32 0.6931472, %v104_v24 }
  0x3d   :  { %v62_v28 = vmul.f32 0.6931472, %v106_v26 }
  0x3e   :  { %v63_v29 = vadd.f32 %v60_v27, %v47_v23 }
  0x3f   :  { %v64_v30 = vadd.f32 %v62_v28, %v48_v25 }
  0x40   :  { %76 = vst [vmem:[#allocation7] sm:$0xff] %v63_v29 }
  0x41   :  { %77 = vst [vmem:[#allocation7 + $0x8] sm:$0xff] %v64_v30 }
  0x42   :  { %140 = shalt.err (!%p137_p12)
}
  0x43   :  { %s141_s28 = scalar_lea.hbm %s209_s2, 256 }
  0x44   :  { %p142_p13 = scmp.ne.s32.totalorder %s209_s2, %s141_s28  ;;  %p145_p0 = scmp.lt.u32.totalorder %s141_s28, %s209_s2 }
  0x46   :  { %p147_p1 = pnand %p145_p0, %p142_p13 }
  0x48   :  { %150 = shalt.err (!%p147_p1)
}
  0x49   :  { %89 = dma.vmem_to_hbm [thread:$0]  %s84_s1, 256, %s209_s2, [#allocation6], %s156_s19, %s156_s19, %s157_s20  }
  0x4a   :  { %153 = dma.done.wait [#allocation6], 256  }
  0x4b   :  { %154 = vsyncadd [#allocation6], 4294967040 }
  0x4c   :  { %93 = vsyncpa [#allocation5], 1 }
  0x4d   :  { %94 = vsyncpa [#allocation6], 1 }

</bundles_post_ra>
